<compile_context>
chip_gen: v7x
topology: tpu7x:2x2x1
jax: 0.10.0
libtpu: 0.0.40
codegen_flags: <defaults>
</compile_context>

<pallas_src>
import functools

import jax
import jax.numpy as jnp
from jax import lax
from jax.experimental import pallas as pl
from jax.experimental.pallas import tpu as pltpu


def _appnp_gcn_kernel(a_ref, xw_ref, b1_ref, w2_ref, b2_ref, o_ref,
                      az_ref, h_ref, *, alpha, tm, a_resident):
    # grid = (K + 1, n_row_tiles): k == 0 is the GCN layer, k in [1, K] is APPNP.
    k = pl.program_id(0)
    i = pl.program_id(1)
    last_k = pl.num_programs(0) - 1
    row0 = pl.multiple_of(i * tm, tm)

    # k-parity ping-pong: step k writes slot k%2, reads slot (k-1)%2.
    wslot = lax.rem(k, 2)
    rslot = 1 - wslot

    # bf16 row slab of A for this tile (no in-kernel cast).
    if a_resident:
        a_t = a_ref[pl.ds(row0, tm), :]          # slice of VMEM-resident A
    else:
        a_t = a_ref[...]                         # streamed (tm, N_pad) slab

    # ---- step 0: GCN layer  z = relu(A_hat @ (X W1) + b1) ----------------------
    @pl.when(k == 0)
    def _():
        z = jnp.dot(a_t, xw_ref[...],
                    preferred_element_type=jnp.float32) + b1_ref[...]
        z = jnp.maximum(z, 0.0)                              # ReLU (f32, VPU)
        az_ref[pl.ds(row0, tm), :] = alpha * z               # teleport term (f32)
        h_ref[0, pl.ds(row0, tm), :] = z.astype(h_ref.dtype)  # h_0 (slot 0)

    # ---- steps 1..K: h_k = (1 - alpha) * A_hat @ h_{k-1} + alpha * z -----------
    @pl.when(k > 0)
    def _():
        h_prev = h_ref[rslot]                                # (N_pad, H_pad) bf16
        h_new = (1.0 - alpha) * jnp.dot(a_t, h_prev,
                                        preferred_element_type=jnp.float32) \
                + az_ref[pl.ds(row0, tm), :]
        h_ref[wslot, pl.ds(row0, tm), :] = h_new.astype(h_ref.dtype)

    # ---- last step: logits = h_K @ W2 + b2, log_softmax over classes -----------
    # Padded class lanes carry bias -1e30, so exp(.) == 0 for them.
    @pl.when(k == last_k)
    def _():
        h_fin = h_ref[wslot, pl.ds(row0, tm), :]             # just-written rows
        logits = jnp.dot(h_fin, w2_ref[...],
                         preferred_element_type=jnp.float32) + b2_ref[...]
        m = jnp.max(logits, axis=1, keepdims=True)
        s = logits - m
        lse = jnp.log(jnp.sum(jnp.exp(s), axis=1, keepdims=True))
        o_ref[pl.ds(row0, tm), :] = (s - lse).astype(o_ref.dtype)


def _round_up(v, m):
    return ((v + m - 1) // m) * m


def _pad2(x, shape, value=0.0):
    out = jnp.full(shape, value, x.dtype)
    return out.at[:x.shape[0], :x.shape[1]].set(x)


def appnp_gcn_forward(x, a_hat, w1, b1, w2, b2, *, alpha, K,
                      tile_rows=256, resident_a=None):
    """Fused GCNConv -> APPNP(K, alpha) -> Linear -> log_softmax.

    tile_rows:  row-tile size (multiple of 8); 128 is a good v5e choice, 256+ for
                v6e/v7x. resident_a: None = auto (keep A in VMEM when it fits).
    """
    N, IN_F = x.shape
    HID = w1.shape[1]
    C = w2.shape[1]

    H_pad = _round_up(HID, 128)
    C_pad = _round_up(C, 128)                  # lane-dense output (unmasked vst)
    N_pad = _round_up(N, 128)
    tm = _round_up(min(tile_rows, N_pad), 8)
    N_pad = _round_up(N_pad, tm)
    n_tiles = N_pad // tm

    # Hoisted GCN feature transform: XW = X @ W1 in plain XLA, bf16 MXU operand.
    xw = jnp.dot(x, w1)                                           # (N, HID) f32
    xw_p = _pad2(xw, (N_pad, H_pad)).astype(jnp.bfloat16)

    a_p = _pad2(a_hat, (N_pad, N_pad)).astype(jnp.bfloat16)       # bf16 A stream
    b1_p = _pad2(b1.reshape(1, -1), (1, H_pad))                   # f32
    w2_p = _pad2(w2, (H_pad, C_pad)).astype(jnp.bfloat16)
    b2_p = _pad2(b2.reshape(1, -1), (1, C_pad), value=-1e30)      # kill pad classes

    # ---- per-generation VMEM budget (v7x = 64 MiB, v5e/v6e = 128 MiB) ----------
    try:
        vmem_cap = int(pltpu.get_tpu_info().vmem_capacity_bytes)
    except Exception:
        vmem_cap = 64 * 1024 * 1024            # conservative (safe on v7x)
    budget = int(vmem_cap * 0.85)

    fixed = (2 * N_pad * H_pad * 2             # XW input (worst-case 2 buffers)
             + 2 * H_pad * C_pad * 2           # W2
             + 2 * N_pad * C_pad * 4           # resident output block
             + N_pad * H_pad * 4               # alpha*z scratch (f32)
             + 2 * N_pad * H_pad * 2           # h ping-pong scratch (bf16)
             + 2 * 1024 * 1024)                # biases + headroom
    a_res_bytes = 2 * N_pad * N_pad * 2
    a_stream_bytes = 2 * tm * N_pad * 2
    if resident_a is None:
        resident_a = (fixed + a_res_bytes) <= budget
    need = fixed + (a_res_bytes if resident_a else a_stream_bytes)
    vmem_limit = int(min(max(need + 4 * 1024 * 1024, 32 * 1024 * 1024), budget))

    if resident_a:
        a_spec = pl.BlockSpec((N_pad, N_pad), lambda k, i: (0, 0))   # load once
    else:
        a_spec = pl.BlockSpec((tm, N_pad), lambda k, i: (i, 0))      # row slabs

    kernel = functools.partial(_appnp_gcn_kernel, alpha=float(alpha), tm=tm,
                               a_resident=bool(resident_a))

    flops = ((K + 1) * 2 * N_pad * N_pad * H_pad + 2 * N_pad * H_pad * C_pad)
    a_bytes = N_pad * N_pad * 2 * (1 if resident_a else (K + 1))
    bytes_accessed = (a_bytes + N_pad * H_pad * 2 + H_pad * C_pad * 2
                      + N_pad * C_pad * 4 + 4 * (H_pad + C_pad))
    cost = pl.CostEstimate(flops=flops, transcendentals=N_pad * C_pad,
                           bytes_accessed=bytes_accessed)

    grid_spec = pltpu.PrefetchScalarGridSpec(
        num_scalar_prefetch=0,
        grid=(K + 1, n_tiles),
        in_specs=[
            a_spec,                                             # A_hat (bf16)
            pl.BlockSpec((N_pad, H_pad), lambda k, i: (0, 0)),  # XW (bf16)
            pl.BlockSpec((1, H_pad), lambda k, i: (0, 0)),      # b1 (f32)
            pl.BlockSpec((H_pad, C_pad), lambda k, i: (0, 0)),  # W2 (bf16)
            pl.BlockSpec((1, C_pad), lambda k, i: (0, 0)),      # b2 (f32)
        ],
        # Constant index_map: output stays VMEM-resident; HBM written exactly once.
        out_specs=pl.BlockSpec((N_pad, C_pad), lambda k, i: (0, 0)),
        scratch_shapes=[
            pltpu.VMEM((N_pad, H_pad), jnp.float32),        # alpha * z (teleport)
            pltpu.VMEM((2, N_pad, H_pad), jnp.bfloat16),    # h ping-pong
        ],
    )

    out = pl.pallas_call(
        kernel,
        out_shape=jax.ShapeDtypeStruct((N_pad, C_pad), jnp.float32),
        grid_spec=grid_spec,
        compiler_params=pltpu.CompilerParams(
            # row-tile axis is NOT parallel-safe: each propagation step reads the
            # full h_{k-1} written by all tiles through shared VMEM scratch.
            dimension_semantics=("arbitrary", "arbitrary"),
            vmem_limit_bytes=vmem_limit,
        ),
        cost_estimate=cost,
    )(a_p, xw_p, b1_p, w2_p, b2_p)

    return out[:N, :C]


def build_normalized_adjacency(edge_index, num_nodes):
    """Dense Â = D^{-1/2} (A + I) D^{-1/2}  (GCN / APPNP symmetric norm)."""
    src, dst = edge_index[0], edge_index[1]
    a = jnp.zeros((num_nodes, num_nodes), jnp.float32)
    a = a.at[src, dst].set(1.0)
    a = a + jnp.eye(num_nodes, dtype=jnp.float32)       # self-loops
    deg = jnp.sum(a, axis=1)
    d_inv_sqrt = jnp.where(deg > 0, lax.rsqrt(deg), 0.0)
    return a * d_inv_sqrt[:, None] * d_inv_sqrt[None, :]


def reference_forward(x, a_hat, w1, b1, w2, b2, alpha, K):
    """Pure-JAX f32 reference of the module forward (same dense Â)."""
    z = jax.nn.relu(a_hat @ (x @ w1) + b1)
    h = z
    for _ in range(K):
        h = (1.0 - alpha) * (a_hat @ h) + alpha * z
    logits = h @ w2 + b2
    return jax.nn.log_softmax(logits, axis=1)


def glorot(key, shape):
    fan_in, fan_out = shape
    lim = jnp.sqrt(6.0 / (fan_in + fan_out))
    return jax.random.uniform(key, shape, jnp.float32, -lim, lim)


if __name__ == "__main__":
    # Small deterministic problem: N nodes, in_features -> hidden -> classes.
    N, IN_F, HID, NUM_CLASSES = 64, 16, 32, 8
    ALPHA, K = 0.1, 4
    E = 256  # number of directed edges

    key = jax.random.PRNGKey(0)
    kx, ke1, ke2, kw1, kw2, kb1, kb2 = jax.random.split(key, 7)

    x = jax.random.normal(kx, (N, IN_F), jnp.float32)
    edge_index = jnp.stack([
        jax.random.randint(ke1, (E,), 0, N),
        jax.random.randint(ke2, (E,), 0, N),
    ], axis=0)                                            # [2, E], int32

    # Parameters (deterministic synthetic init; shapes from module __init__).
    # NOTE: dropout from __init__ is never applied in the module's forward().
    w1 = glorot(kw1, (IN_F, HID))                         # GCNConv weight
    b1 = jax.random.normal(kb1, (1, HID), jnp.float32) * 0.01
    w2 = glorot(kw2, (HID, NUM_CLASSES))                  # fc weight (in, out)
    b2 = jax.random.normal(kb2, (1, NUM_CLASSES), jnp.float32) * 0.01

    a_hat = build_normalized_adjacency(edge_index, N)
    ref = reference_forward(x, a_hat, w1, b1, w2, b2, ALPHA, K)

    # Config 1: small tiles, A streamed in row slabs (exercises the multi-tile
    # path and the k-parity ping-pong across several row tiles).
    out_s = appnp_gcn_forward(x, a_hat, w1, b1, w2, b2, alpha=ALPHA, K=K,
                              tile_rows=32, resident_a=False)
    out_s = jax.block_until_ready(out_s)

    # Config 2: default MXU-sized tiles, VMEM-resident A (auto).
    out_r = appnp_gcn_forward(x, a_hat, w1, b1, w2, b2, alpha=ALPHA, K=K,
                              tile_rows=256)
    out_r = jax.block_until_ready(out_r)

    for out in (out_s, out_r):
        assert out.shape == (N, NUM_CLASSES)
        # log_softmax rows must exponentiate-sum to 1 (f32 softmax in the kernel).
        assert jnp.allclose(jnp.sum(jnp.exp(out), axis=1), 1.0, atol=1e-4)
        # bf16-MXU / f32-accumulate kernel vs. pure f32 reference.
        max_abs = float(jnp.max(jnp.abs(out - ref)))
        assert max_abs < 0.1, f"mismatch vs f32 reference: {max_abs}"

    print("KERNEL_OK")
</pallas_src>

<mosaic_0001>
module attributes {stable_mosaic.version = 11 : i64} {
  func.func @_appnp_gcn_kernel(%arg0: i32, %arg1: i32, %arg2: memref<32x128xbf16, #tpu.memory_space<vmem>>, %arg3: memref<128x128xbf16, #tpu.memory_space<vmem>>, %arg4: memref<1x128xf32, #tpu.memory_space<vmem>>, %arg5: memref<128x128xbf16, #tpu.memory_space<vmem>>, %arg6: memref<1x128xf32, #tpu.memory_space<vmem>>, %arg7: memref<128x128xf32, #tpu.memory_space<vmem>>, %arg8: memref<128x128xf32, #tpu.memory_space<vmem>>, %arg9: memref<2x128x128xbf16, #tpu.memory_space<vmem>>) attributes {dimension_semantics = [#tpu.dimension_semantics<arbitrary>, #tpu.dimension_semantics<arbitrary>], iteration_bounds = array<i64: 5, 4>, scalar_prefetch = 0 : i64, scratch_operands = 2 : i64, tpu.core_type = #tpu.core_type<tc>, window_params = [{transform_indices = @transform_0, window_bounds = array<i64: 32, 128>}, {pipeline_mode = #tpu.pipeline_mode<synchronous>, transform_indices = @transform_1, window_bounds = array<i64: 128, 128>}, {pipeline_mode = #tpu.pipeline_mode<synchronous>, transform_indices = @transform_2, window_bounds = array<i64: 1, 128>}, {pipeline_mode = #tpu.pipeline_mode<synchronous>, transform_indices = @transform_3, window_bounds = array<i64: 128, 128>}, {pipeline_mode = #tpu.pipeline_mode<synchronous>, transform_indices = @transform_4, window_bounds = array<i64: 1, 128>}, {pipeline_mode = #tpu.pipeline_mode<synchronous>, transform_indices = @transform_5, window_bounds = array<i64: 128, 128>}]} {
    %c32_i32 = arith.constant 32 : i32
    %0 = arith.muli %arg1, %c32_i32 : i32
    %1 = tpu.assume_multiple %0, 32 : i32
    %c2_i32 = arith.constant 2 : i32
    %2 = arith.remsi %arg0, %c2_i32 : i32
    %c1_i32 = arith.constant 1 : i32
    %3 = arith.subi %c1_i32, %2 : i32
    %c0 = arith.constant 0 : index
    %c0_0 = arith.constant 0 : index
    %4 = vector.load %arg2[%c0, %c0_0] : memref<32x128xbf16, #tpu.memory_space<vmem>>, vector<32x128xbf16>
    %c0_i32 = arith.constant 0 : i32
    %5 = arith.cmpi eq, %arg0, %c0_i32 : i32
    %6 = arith.extui %5 : i1 to i32
    %c0_i32_1 = arith.constant 0 : i32
    %7 = arith.cmpi ne, %6, %c0_i32_1 : i32
    scf.if %7 {
      %c0_5 = arith.constant 0 : index
      %c0_6 = arith.constant 0 : index
      %14 = vector.load %arg3[%c0_5, %c0_6] : memref<128x128xbf16, #tpu.memory_space<vmem>>, vector<128x128xbf16>
      %cst = arith.constant dense<0.000000e+00> : vector<32x128xf32>
      %15 = tpu.matmul %4, %14, %cst {dimension_numbers = #tpu.dot_dimension_numbers<[1], [0], [0], [1], [0, 0, 1, 1], [], []>} : vector<32x128xbf16>, vector<128x128xbf16>, vector<32x128xf32> -> vector<32x128xf32>
      %c0_7 = arith.constant 0 : index
      %c0_8 = arith.constant 0 : index
      %16 = vector.load %arg4[%c0_7, %c0_8] : memref<1x128xf32, #tpu.memory_space<vmem>>, vector<1x128xf32>
      %17 = vector.broadcast %16 : vector<1x128xf32> to vector<32x128xf32>
      %18 = arith.addf %15, %17 : vector<32x128xf32>
      %cst_9 = arith.constant 0.000000e+00 : f32
      %19 = vector.broadcast %cst_9 : f32 to vector<32x128xf32>
      %20 = arith.maximumf %18, %19 : vector<32x128xf32>
      %cst_10 = arith.constant 1.000000e-01 : f32
      %21 = vector.broadcast %cst_10 : f32 to vector<32x128xf32>
      %22 = arith.mulf %21, %20 : vector<32x128xf32>
      %23 = arith.index_cast %1 : i32 to index
      %c0_11 = arith.constant 0 : index
      %24 = vector.load %arg8[%23, %c0_11] : memref<128x128xf32, #tpu.memory_space<vmem>>, vector<32x128xf32>
      tpu.vector_store %arg8[%23, %c0_11], %22 {strides = array<i32>} : memref<128x128xf32, #tpu.memory_space<vmem>>, vector<32x128xf32>,
      %25 = arith.truncf %20 : vector<32x128xf32> to vector<32x128xbf16>
      %c0_12 = arith.constant 0 : index
      %26 = arith.index_cast %1 : i32 to index
      %c0_13 = arith.constant 0 : index
      %27 = vector.load %arg9[%c0_12, %26, %c0_13] : memref<2x128x128xbf16, #tpu.memory_space<vmem>>, vector<1x32x128xbf16>
      %28 = vector.shape_cast %27 : vector<1x32x128xbf16> to vector<32x128xbf16>
      %29 = vector.shape_cast %25 : vector<32x128xbf16> to vector<1x32x128xbf16>
      tpu.vector_store %arg9[%c0_12, %26, %c0_13], %29 {strides = array<i32>} : memref<2x128x128xbf16, #tpu.memory_space<vmem>>, vector<1x32x128xbf16>,
    } else {
    }
    %c0_i32_2 = arith.constant 0 : i32
    %8 = arith.cmpi sgt, %arg0, %c0_i32_2 : i32
    %9 = arith.extui %8 : i1 to i32
    %c0_i32_3 = arith.constant 0 : i32
    %10 = arith.cmpi ne, %9, %c0_i32_3 : i32
    scf.if %10 {
      %14 = arith.index_cast %3 : i32 to index
      %c0_5 = arith.constant 0 : index
      %c0_6 = arith.constant 0 : index
      %15 = vector.load %arg9[%14, %c0_5, %c0_6] : memref<2x128x128xbf16, #tpu.memory_space<vmem>>, vector<1x128x128xbf16>
      %16 = vector.shape_cast %15 : vector<1x128x128xbf16> to vector<128x128xbf16>
      %cst = arith.constant dense<0.000000e+00> : vector<32x128xf32>
      %17 = tpu.matmul %4, %16, %cst {dimension_numbers = #tpu.dot_dimension_numbers<[1], [0], [0], [1], [0, 0, 1, 1], [], []>} : vector<32x128xbf16>, vector<128x128xbf16>, vector<32x128xf32> -> vector<32x128xf32>
      %cst_7 = arith.constant 0.899999976 : f32
      %18 = vector.broadcast %cst_7 : f32 to vector<32x128xf32>
      %19 = arith.mulf %18, %17 : vector<32x128xf32>
      %20 = arith.index_cast %1 : i32 to index
      %c0_8 = arith.constant 0 : index
      %21 = vector.load %arg8[%20, %c0_8] : memref<128x128xf32, #tpu.memory_space<vmem>>, vector<32x128xf32>
      %22 = arith.addf %19, %21 : vector<32x128xf32>
      %23 = arith.truncf %22 : vector<32x128xf32> to vector<32x128xbf16>
      %24 = arith.index_cast %2 : i32 to index
      %25 = arith.index_cast %1 : i32 to index
      %c0_9 = arith.constant 0 : index
      %26 = vector.load %arg9[%24, %25, %c0_9] : memref<2x128x128xbf16, #tpu.memory_space<vmem>>, vector<1x32x128xbf16>
      %27 = vector.shape_cast %26 : vector<1x32x128xbf16> to vector<32x128xbf16>
      %28 = vector.shape_cast %23 : vector<32x128xbf16> to vector<1x32x128xbf16>
      tpu.vector_store %arg9[%24, %25, %c0_9], %28 {strides = array<i32>} : memref<2x128x128xbf16, #tpu.memory_space<vmem>>, vector<1x32x128xbf16>,
    } else {
    }
    %c4_i32 = arith.constant 4 : i32
    %11 = arith.cmpi eq, %arg0, %c4_i32 : i32
    %12 = arith.extui %11 : i1 to i32
    %c0_i32_4 = arith.constant 0 : i32
    %13 = arith.cmpi ne, %12, %c0_i32_4 : i32
    scf.if %13 {
      %14 = arith.index_cast %2 : i32 to index
      %15 = arith.index_cast %1 : i32 to index
      %c0_5 = arith.constant 0 : index
      %16 = vector.load %arg9[%14, %15, %c0_5] : memref<2x128x128xbf16, #tpu.memory_space<vmem>>, vector<1x32x128xbf16>
      %17 = vector.shape_cast %16 : vector<1x32x128xbf16> to vector<32x128xbf16>
      %c0_6 = arith.constant 0 : index
      %c0_7 = arith.constant 0 : index
      %18 = vector.load %arg5[%c0_6, %c0_7] : memref<128x128xbf16, #tpu.memory_space<vmem>>, vector<128x128xbf16>
      %cst = arith.constant dense<0.000000e+00> : vector<32x128xf32>
      %19 = tpu.matmul %17, %18, %cst {dimension_numbers = #tpu.dot_dimension_numbers<[1], [0], [0], [1], [0, 0, 1, 1], [], []>} : vector<32x128xbf16>, vector<128x128xbf16>, vector<32x128xf32> -> vector<32x128xf32>
      %c0_8 = arith.constant 0 : index
      %c0_9 = arith.constant 0 : index
      %20 = vector.load %arg6[%c0_8, %c0_9] : memref<1x128xf32, #tpu.memory_space<vmem>>, vector<1x128xf32>
      %21 = vector.broadcast %20 : vector<1x128xf32> to vector<32x128xf32>
      %22 = arith.addf %19, %21 : vector<32x128xf32>
      %cst_10 = arith.constant dense<0xFF800000> : vector<32xf32>
      %23 = vector.multi_reduction <maximumf>, %22, %cst_10 [1] : vector<32x128xf32> to vector<32xf32>
      %24 = vector.shape_cast %23 : vector<32xf32> to vector<32x1xf32>
      %25 = vector.broadcast %24 : vector<32x1xf32> to vector<32x128xf32>
      %26 = arith.subf %22, %25 : vector<32x128xf32>
      %27 = math.exp %26 : vector<32x128xf32>
      %cst_11 = arith.constant dense<0.000000e+00> : vector<32xf32>
      %28 = vector.multi_reduction <add>, %27, %cst_11 [1] : vector<32x128xf32> to vector<32xf32>
      %29 = vector.shape_cast %28 : vector<32xf32> to vector<32x1xf32>
      %30 = math.log %29 : vector<32x1xf32>
      %31 = vector.broadcast %30 : vector<32x1xf32> to vector<32x128xf32>
      %32 = arith.subf %26, %31 : vector<32x128xf32>
      %33 = arith.index_cast %1 : i32 to index
      %c0_12 = arith.constant 0 : index
      %34 = vector.load %arg7[%33, %c0_12] : memref<128x128xf32, #tpu.memory_space<vmem>>, vector<32x128xf32>
      tpu.vector_store %arg7[%33, %c0_12], %32 {strides = array<i32>} : memref<128x128xf32, #tpu.memory_space<vmem>>, vector<32x128xf32>,
    } else {
    }
    return
  }
  func.func @transform_0(%arg0: i32, %arg1: i32) -> (i32, i32) {
    %c0_i32 = arith.constant 0 : i32
    %c0_i32_0 = arith.constant 0 : i32
    return %arg1, %c0_i32 : i32, i32
  }
  func.func @transform_1(%arg0: i32, %arg1: i32) -> (i32, i32) {
    %c0_i32 = arith.constant 0 : i32
    %c0_i32_0 = arith.constant 0 : i32
    %c0_i32_1 = arith.constant 0 : i32
    return %c0_i32, %c0_i32_0 : i32, i32
  }
  func.func @transform_2(%arg0: i32, %arg1: i32) -> (i32, i32) {
    %c0_i32 = arith.constant 0 : i32
    %c0_i32_0 = arith.constant 0 : i32
    %c0_i32_1 = arith.constant 0 : i32
    return %c0_i32, %c0_i32_0 : i32, i32
  }
  func.func @transform_3(%arg0: i32, %arg1: i32) -> (i32, i32) {
    %c0_i32 = arith.constant 0 : i32
    %c0_i32_0 = arith.constant 0 : i32
    %c0_i32_1 = arith.constant 0 : i32
    return %c0_i32, %c0_i32_0 : i32, i32
  }
  func.func @transform_4(%arg0: i32, %arg1: i32) -> (i32, i32) {
    %c0_i32 = arith.constant 0 : i32
    %c0_i32_0 = arith.constant 0 : i32
    %c0_i32_1 = arith.constant 0 : i32
    return %c0_i32, %c0_i32_0 : i32, i32
  }
  func.func @transform_5(%arg0: i32, %arg1: i32) -> (i32, i32) {
    %c0_i32 = arith.constant 0 : i32
    %c0_i32_0 = arith.constant 0 : i32
    %c0_i32_1 = arith.constant 0 : i32
    return %c0_i32, %c0_i32_0 : i32, i32
  }
}

</mosaic_0001>

<bundles_post_ra>
// kernel: tpu_custom_call.1
= control target key start
LH: loop header
LB: loop body
LE: loop exit
PB: predicated region body
PF: predicated region fallthrough
CT: control target
= control target key end

     0   :  { %10 = vsyncpa [#allocation5], 0  ;;  %s1625_s0 = inlined_call_operand.hbm [shape: bf16[128,128], index: 0, kind: input, shape index: {}]   ;;  %s1626_s1 = inlined_call_operand.hbm [shape: bf16[128,128], index: 1, kind: input, shape index: {}]   ;;  %s1627_s2 = inlined_call_operand.vmem [shape: f32[1,128], index: 2, kind: input, shape index: {}]   ;;  %s1628_s3 = inlined_call_operand.hbm [shape: bf16[128,128], index: 3, kind: input, shape index: {}]   ;;  %s1629_s4 = inlined_call_operand.vmem [shape: f32[1,128], index: 4, kind: input, shape index: {}]   ;;  %s1630_s5 = inlined_call_operand.hbm [shape: f32[128,128], index: 5, kind: output, shape index: {}]  }
   0x1   :  { %12 = vsyncpa [#allocation5 + $0x1], 0 }
   0x2   :  { %13 = vsyncpa [#allocation8], 0 }
   0x3   :  { %14 = vsyncpa [#allocation6], 0  ;;  %s1330_s18 = smov 0   ;;  %s1332_s19 = smov 0  }
   0x4   :  { %s1334_s20 = smov 0   ;;  %s1336_s21 = smov 0  }
   0x5   :  { %s1338_s22 = smov 0   ;;  %s1340_s23 = smov 0  }
   0x6   :  { %s1342_s24 = smov 0   ;;  %s1344_s25 = smov 0  }
   0x7 LB: > { %s1635_s26 = sadd.s32 4294967295, %s1290_s25   ;;  %p52_p0 = scmp.ne.s32.totalorder %s1266_s19, %s1262_s18  ;;  %s1290_s25 = sphi %s1344_s25, %s20_s25   ;;  %s1286_s24 = sphi %s1342_s24, %s1655_s24   ;;  %s1282_s23 = sphi %s1340_s23, %s1654_s23   ;;  %s1278_s22 = sphi %s1338_s22, %s1653_s22   ;;  %s1274_s21 = sphi %s1336_s21, %s1652_s21   ;;  %s1270_s20 = sphi %s1334_s20, %s1651_s20   ;;  %s1266_s19 = sphi %s1332_s19, %s1650_s19   ;;  %s1262_s18 = sphi %s1330_s18, %s1649_s18  }
   0x8   : > { %p1372_p1 = scmp.eq.s32.totalorder %s1635_s26, 0  ;;  %p828_p2 = scmp.ge.s32.totalorder %s1290_s25, 1 }
   0x9   : > { %p168_p3 = scmp.lt.s32.totalorder %s1290_s25, 21  ;;  %s1292_s30 = smov [#allocation7]  }
   0xa   : > { %s1637_s27 = scalar_select %p1372_p1, 1, 0 }
   0xb   : > { %p1380_p4 = por %p1372_p1, %p52_p0  ;;  %p1384_p5 = pnand %p828_p2, %p168_p3 }
   0xc   : > { %s180_s6 = sshll.u32 %s1292_s30, 4  ;;  %s1293_s8 = smov [#allocation9]   ;;  %s181_s6 = int_to_ptr.vmem [resolvable:$true] %s180_s6 }
   0xd   : > { %s1638_s28 = scalar_select %p1380_p4, 1, 0 }
   0xe   : > { %s1639_s29 = scalar_select %p1384_p5, 1, 0 }
   0xf   : > { %p983_p6 = pneg %p1384_p5  ;;  %s196_s9 = sshll.u32 %s1293_s8, 4  ;;  %s1396_s9 = int_to_ptr.vmem [resolvable:$true] %s196_s9 }
  0x10   : > { %s1104_s12 = scalar_lea.hbm %s1626_s1, 1024 }
  0x11   : > { %p1392_p7 = pnand %p983_p6, %p1372_p1  ;;  %p1105_p8 = scmp.ne.s32.totalorder %s1626_s1, %s1104_s12 }
  0x12   : > { %p1111_p12 = scmp.lt.u32.totalorder %s1104_s12, %s1626_s1 }
  0x13   : > { %p1106_p9 = pneg %p1392_p7 }
  0x15   : > { %p1107_p10 = pnand %p1106_p9, %p1105_p8 }
  0x17   : > { %p1108_p11 = pneg %p1107_p10 }
  0x19   : > { %p1113_p13 = pnand %p1111_p12, %p1108_p11 }
  0x1b   : > { %1116 = shalt.err (!%p1113_p13)
}
  0x1c   : > { %s1117_s17 = scalar_lea.vmem %s181_s6, 1024  ;;  %p1125_p6 = scmp.lt.s32.totalorder %s181_s6, %s181_s6 }
  0x1d   : > { %p1118_p0 = scmp.ne.s32.totalorder %s181_s6, %s1117_s17  ;;  %p1126_p1 = scmp.lt.s32.totalorder %s1117_s17, %s1117_s17 }
  0x1f   : > { %p1120_p2 = pnand %p1118_p0, %p1106_p9  ;;  %p1127_p4 = por %p1126_p1, %p1125_p6 }
  0x21   : > { %p1121_p3 = pneg %p1120_p2 }
  0x23   : > { %p1128_p5 = pnand %p1127_p4, %p1121_p3 }
  0x25   : > { %1131 = shalt.err (!%p1128_p5)
}
  0x26   : > { %s1636_s18 = smov 64   ;;  %s1295_s30 = smov 4  }
  0x27   : > { %986 = dma.hbm_to_vmem [thread:$0]  (!%p1392_p7), %s1626_s1, 1024, %s181_s6, [#allocation8], %s1636_s18, %s1636_s18, %s1295_s30  }
  0x28   : > { %s1132_s13 = scalar_lea.hbm %s1628_s3, 1024 }
  0x29   : > { %p1133_p1 = scmp.ne.s32.totalorder %s1628_s3, %s1132_s13  ;;  %p1139_p8 = scmp.lt.u32.totalorder %s1132_s13, %s1628_s3 }
  0x2b   : > { %p1135_p4 = pnand %p1133_p1, %p1106_p9 }
  0x2d   : > { %p1136_p5 = pneg %p1135_p4 }
  0x2f   : > { %p1141_p10 = pnand %p1139_p8, %p1136_p5 }
  0x31   : > { %1144 = shalt.err (!%p1141_p10)
}
  0x32   : > { %s1145_s6 = scalar_lea.vmem %s1396_s9, 1024  ;;  %p1153_p0 = scmp.lt.s32.totalorder %s1396_s9, %s1396_s9 }
  0x33   : > { %p1146_p11 = scmp.ne.s32.totalorder %s1396_s9, %s1145_s6  ;;  %p1154_p2 = scmp.lt.s32.totalorder %s1145_s6, %s1145_s6 }
  0x35   : > { %p1148_p12 = pnand %p1146_p11, %p1106_p9  ;;  %p1155_p3 = por %p1154_p2, %p1153_p0 }
  0x37   : > { %p1149_p13 = pneg %p1148_p12 }
  0x39   : > { %p1156_p6 = pnand %p1155_p3, %p1149_p13 }
  0x3b   : > { %1159 = shalt.err (!%p1156_p6)
}
  0x3c   : > { %989 = dma.hbm_to_vmem [thread:$0]  (!%p1392_p7), %s1628_s3, 1024, %s1396_s9, [#allocation8], %s1636_s18, %s1636_s18, %s1295_s30  }
  0x3d   : > { %s29_s7 = sadd.s32 1, %s1282_s23  ;;  %s32_s11 = sadd.s32 1, %s1286_s24 }
  0x3e   : > { %p30_p9 = scmp.ge.s32.totalorder %s29_s7, 4  ;;  %s39_s12 = sadd.s32 1, %s1270_s20 }
  0x3f   : > { %p46_p1 = scmp.ne.s32.totalorder %s1270_s20, %s1266_s19  ;;  %p47_p4 = scmp.eq.s32.totalorder %s1290_s25, 0 }
  0x40   : > { %s1657_s7 = smov (%p30_p9, %s29_s7), 0  ;;  %s1659_s11 = smov (!%p30_p9, %s32_s11), %s1286_s24 }
  0x41   : > { %s36_s13 = ssub.s32 %s1282_s23, %s1657_s7  ;;  %p1462_p5 = por %p47_p4, %p46_p1 }
  0x42   : > { %p34_p8 = scmp.ge.s32.totalorder %s1659_s11, 5  ;;  %p37_p7 = scmp.eq.s32.totalorder %s36_s13, 0 }
  0x43   : > { %p996_p10 = scmp.lt.s32.totalorder %s1290_s25, 20  ;;  %s213_s9 = sand.u32 1, %s1270_s20  }
  0x44   : > { %s1661_s11 = smov (%p34_p8, %s1659_s11), 0  ;;  %s832_s16 = sshll.u32 %s213_s9, 4 }
  0x45   : > { %s1471_s15 = scalar_select %p37_p7, %s1270_s20, %s39_s12  }
  0x46   : > { %s877_s17 = sshll.u32 %s1282_s23, 8  ;;  %s217_s26 = scalar_lea.vmem [#allocation4], %s832_s16 }
  0x47   : > { %s1477_s10 = scalar_lea.hbm %s1625_s0, %s877_s17  ;;  %s224_s18 = sshll.u32 %s217_s26, 4  ;;  %s1479_s18 = int_to_ptr.vmem [resolvable:$true] %s224_s18 }
  0x48   : > { %p1483_p11 = pnand %p996_p10, %p1462_p5  ;;  %s1487_s12 = scalar_lea.sflag [#allocation5], %s213_s9 }
  0x49   : > { %s1160_s6 = scalar_lea.hbm %s1477_s10, 256  ;;  %s1165_s14 = scalar_lea.hbm %s1625_s0, 1024 }
  0x4a   : > { %p1161_p12 = scmp.ne.s32.totalorder %s1477_s10, %s1160_s6  ;;  %p1162_p13 = pneg %p1483_p11 }
  0x4b   : > { %p1166_p3 = scmp.lt.u32.totalorder %s1477_s10, %s1625_s0  ;;  %p1167_p6 = scmp.lt.u32.totalorder %s1165_s14, %s1160_s6 }
  0x4c   : > { %p1163_p0 = pnand %p1162_p13, %p1161_p12  ;;  %p1169_p1 = scmp.lt.u32.totalorder %s1160_s6, %s1477_s10 }
  0x4d   : > { %p1168_p9 = por %p1167_p6, %p1166_p3 }
  0x4e   : > { %p1164_p2 = pneg %p1163_p0 }
  0x4f   : > { %p1170_p4 = por %p1169_p1, %p1168_p9 }
  0x51   : > { %p1171_p5 = pnand %p1170_p4, %p1164_p2 }
  0x53   : > { %1174 = shalt.err (!%p1171_p5)
}
  0x54   : > { %s1175_s9 = scalar_lea.vmem %s1479_s18, 256  ;;  %s1296_s26 = smov [#allocation4]  }
  0x55   : > { %p1176_p8 = scmp.ne.s32.totalorder %s1479_s18, %s1175_s9  ;;  %s1180_s16 = sshll.u32 %s1296_s26, 4  ;;  %s1181_s16 = int_to_ptr.vmem [resolvable:$false] %s1180_s16 }
  0x56   : > { %s1182_s17 = scalar_lea.vmem %s1181_s16, 512  ;;  %p1183_p12 = scmp.lt.s32.totalorder %s1479_s18, %s1181_s16 }
  0x57   : > { %p1178_p7 = pnand %p1176_p8, %p1162_p13  ;;  %p1184_p0 = scmp.lt.s32.totalorder %s1182_s17, %s1175_s9 }
  0x59   : > { %p1179_p10 = pneg %p1178_p7  ;;  %p1185_p3 = por %p1184_p0, %p1183_p12 }
  0x5b   : > { %p1186_p6 = pnand %p1185_p3, %p1179_p10 }
  0x5d   : > { %1189 = shalt.err (!%p1186_p6)
}
  0x5e   : > { %s1643_s6 = smov 64   ;;  %p1644_p13 = scmp.ne.s32.totalorder %s1639_s29, 0 }
  0x5f   : > { %993 = dma.hbm_to_vmem [thread:$0]  (!%p1483_p11), %s1477_s10, 256, %s1479_s18, %s1487_s12, %s1643_s6, %s1643_s6, %s1295_s30  }
  0x60   : > { %236 = sbr.rel (%p1644_p13) target bundleno = 1223 (0x4c7), region = 40  ;;  %s238_s14 = sand.u32 (!%p1644_p13), 1, %s1266_s19  }
  0x61   : > { %s836_s8 = sshll.u32 (!%p1644_p13), %s238_s14, 4  ;;  %s239_s9 = scalar_lea.sflag (!%p1644_p13), [#allocation5], %s238_s14 }
  0x62   : > { %s242_s26 = scalar_lea.vmem (!%p1644_p13), [#allocation4], %s836_s8  ;;  %p1645_p2 = scmp.ne.s32.totalorder (!%p1644_p13), %s1638_s28, 0 }
  0x67   : > { %1249 = dma.done.wait (%p1645_p2), %s239_s9, 256  }
  0x68   : > { %1251 = vsyncadd (%p1645_p2), %s239_s9, 4294967040  ;;  %p1646_p9 = scmp.ne.s32.totalorder %s1637_s27, 0 }
  0x6a   : > { %1253 = dma.done.wait (%p1646_p9), [#allocation8], 2048  }
  0x6b   : > { %1255 = vsyncadd (%p1646_p9), [#allocation8], 4294965248  ;;  %s1530_s29 = sshll.u32 %s1274_s21, 5  ;;  %p275_p11 = scmp.lt.s32.totalorder %s1278_s22, 0  ;;  %v1537_v0 = vld [vmem:[%s242_s26] sm:$0xf] }
  0x6c   : > { %s276_s18 = ssub.s32 0, %s1278_s22  ;;  %v1539_v1 = vld [vmem:[%s242_s26 + $0x4] sm:$0xf]  ;;  %v1541_v2 = vld [vmem:[%s242_s26 + $0x8] sm:$0xf]  ;;  %p841_p1 = scmp.ne.s32.totalorder %s1278_s22, 0 }
  0x6d   : > { %s840_s30 = smin.u32 %s1278_s22, %s276_s18  ;;  %v1543_v3 = vld [vmem:[%s242_s26 + $0xc] sm:$0xf]  ;;  %v1072_v4 = vld [vmem:[#allocation7] sm:$0xff] (!%p841_p1)   ;;  %v843_v5 = vcombine.low (!%p841_p1), %v1537_v0, %v1539_v1  ;;  %v1074_v7 = vld [vmem:[#allocation7 + $0x10] sm:$0xff] (!%p841_p1)   ;;  %s437_s12 = sshra.s32 (!%p841_p1), %s1530_s29, 4 }
  0x6e   : > { %s278_s10 = sand.u32 1, %s840_s30   ;;  %289 = sbr.rel (%p841_p1) target bundleno = 364 (0x16c), region = 56  ;;  %v1073_v6 = vld [vmem:[#allocation7 + $0x8] sm:$0xff] (!%p841_p1)   ;;  %909 = vmatprep.subr.bf16.mxu0 (!%p841_p1), %v1072_v4  ;;  %v1075_v8 = vld [vmem:[#allocation7 + $0x18] sm:$0xff] (!%p841_p1)   ;;  %v1076_v9 = vld [vmem:[#allocation7 + $0x20] sm:$0xff] (!%p841_p1)   ;;  %v844_v13 = vcombine.low (!%p841_p1), %v1541_v2, %v1543_v3 }
  0x6f   : > { %s279_s13 = ssub.s32 0, %s278_s10  ;;  %925 = vmatprep.mubr.bf16.mxu0 (!%p841_p1), %v843_v5  ;;  %910 = vmatpush3.bf16.msra.mxu0 (!%p841_p1), %v1072_v4  ;;  %v1077_v10 = vld [vmem:[#allocation7 + $0x28] sm:$0xff] (!%p841_p1)   ;;  %v1078_v11 = vld [vmem:[#allocation7 + $0x30] sm:$0xff] (!%p841_p1)   ;;  %v1079_v12 = vld [vmem:[#allocation7 + $0x38] sm:$0xff] (!%p841_p1)   ;;  %s853_s16 = sshll.u32 (!%p841_p1), %s437_s12, 3 }
  0x70   : > { %s1663_s13 = smov (!%p275_p11, %s279_s13), %s278_s10  ;;  %911 = vmatprep.subr.bf16.mxu0 (!%p841_p1), %v1073_v6  ;;  %v842_v14 = vld [vmem:[%s1627_s2] ss:$0 sm:$0xff] (!%p841_p1)  ;;  %s430_s17 = scalar_lea.vmem (!%p841_p1), [#allocation2], %s1530_s29 }
  0x71   : > { %s281_s27 = ssub.s32 1, %s1663_s13  ;;  %s440_s6 = scalar_lea.vmem (!%p841_p1), [#allocation3], %s853_s16 }
  0x73   : > { %912 = vmatpush3.bf16.msra.mxu0 (!%p841_p1), %v1073_v6 }
  0x74   : > { %913 = vmatprep.subr.bf16.mxu0 (!%p841_p1), %v1074_v7 }
  0x77   : > { %914 = vmatpush3.bf16.msra.mxu0 %v1074_v7 }
  0x78   : > { %915 = vmatprep.subr.bf16.mxu0 %v1075_v8 }
  0x7b   : > { %916 = vmatpush3.bf16.msra.mxu0 %v1075_v8 }
  0x7c   : > { %917 = vmatprep.subr.bf16.mxu0 %v1076_v9 }
  0x7f   : > { %918 = vmatpush3.bf16.msra.mxu0 %v1076_v9 }
  0x80   : > { %919 = vmatprep.subr.bf16.mxu0 %v1077_v10 }
  0x83   : > { %920 = vmatpush3.bf16.msra.mxu0 %v1077_v10 }
  0x84   : > { %921 = vmatprep.subr.bf16.mxu0 %v1078_v11 }
  0x87   : > { %922 = vmatpush3.bf16.msra.mxu0 %v1078_v11 }
  0x88   : > { %923 = vmatprep.subr.bf16.mxu0 %v1079_v12 }
  0x8b   : > { %924 = vmatpush3.bf16.msra.mxu0 %v1079_v12 }
  0x8e   : > { %926 = vmatmul.mubr.bf16.vlgmr.msra.gmra.mrb[0].mxu0 %v844_v13 }
 0x161   : > { %v927_v15 = vpop.f32.mrb[0].mxu0 }
 0x162   : > { %v416_v16 = vadd.f32 %v927_v15, %v842_v14  ;;  %v407_v17 = vpop.f32.mrb[1].mxu0 }
 0x163   : > { %v408_v18 = vadd.f32 %v842_v14, %v407_v17  ;;  %v928_v19 = vpop.f32.mrb[2].mxu0 }
 0x164   : > { %v424_v20 = vmax.f32 %v416_v16, 0.0  ;;  %v419_v21 = vadd.f32 %v928_v19, %v842_v14  ;;  %v410_v22 = vpop.f32.mrb[3].mxu0 }
 0x165   : > { %v422_v23 = vmax.f32 %v408_v18, 0.0  ;;  %v411_v24 = vadd.f32 %v842_v14, %v410_v22 }
 0x166   : > { %v428_v25 = vmul.f32 0.1, %v424_v20  ;;  %v425_v26 = vmax.f32 %v419_v21, 0.0 }
 0x167   : > { %v426_v27 = vmul.f32 0.1, %v422_v23  ;;  %v423_v28 = vmax.f32 %v411_v24, 0.0 }
 0x168   : > { %433 = vst [vmem:[%s430_s17 + $0x10] sm:$0xff] %v428_v25  ;;  %v429_v29 = vmul.f32 0.1, %v425_v26  ;;  %v436_v30 = vpack.c.bf16 %v425_v26, %v424_v20 }
 0x169   : > { %431 = vst [vmem:[%s430_s17] sm:$0xff] %v426_v27  ;;  %v427_v31 = vmul.f32 0.1, %v423_v28  ;;  %v435_v32 = vpack.c.bf16 %v423_v28, %v422_v23 }
 0x16a   : > { %434 = vst [vmem:[%s430_s17 + $0x18] sm:$0xff] %v429_v29  ;;  %442 = vst [vmem:[%s440_s6 + $0x8] sm:$0xff] %v436_v30 }
 0x16b   : > { %432 = vst [vmem:[%s430_s17 + $0x8] sm:$0xff] %v427_v31  ;;  %441 = vst [vmem:[%s440_s6] sm:$0xff] %v435_v32 }
 0x16c PF: > { %p854_p4 = scmp.le.s32.totalorder %s1278_s22, 0 }
 0x16d   : > { %s878_s14 = sshll.u32 (!%p854_p4), %s281_s27, 6  ;;  %v857_v33 = vcombine.low (!%p854_p4), %v1537_v0, %v1539_v1  ;;  %v858_v42 = vcombine.low (!%p854_p4), %v1541_v2, %v1543_v3  ;;  %s534_s9 = sshra.s32 (!%p854_p4), %s1530_s29, 4 }
 0x16e   : > { %446 = sbr.rel (%p854_p4) target bundleno = 625 (0x271), region = 60  ;;  %s449_s8 = scalar_lea.vmem (!%p854_p4), [#allocation3], %s878_s14 }
 0x16f   : > { %945 = vmatprep.mubr.bf16.mxu0 (!%p854_p4), %v857_v33  ;;  %s859_s26 = sshll.u32 (!%p854_p4), %s1663_s13, 3  ;;  %s523_s30 = scalar_lea.vmem (!%p854_p4), [#allocation2], %s1530_s29 }
 0x170   : > { %s537_s18 = sadd.s32 (!%p854_p4), %s859_s26, %s534_s9 }
 0x171   : > { %s860_s10 = sshll.u32 (!%p854_p4), %s537_s18, 3 }
 0x172   : > { %v450_v34 = vld [vmem:[%s449_s8] sm:$0xff] (!%p854_p4)  ;;  %v451_v35 = vld [vmem:[%s449_s8 + $0x8] sm:$0xff] (!%p854_p4)  ;;  %v452_v36 = vld [vmem:[%s449_s8 + $0x10] sm:$0xff] (!%p854_p4)  ;;  %s539_s27 = scalar_lea.vmem (!%p854_p4), [#allocation3], %s860_s10 }
 0x173   : > { %929 = vmatprep.subr.bf16.mxu0 (!%p854_p4), %v450_v34  ;;  %v453_v37 = vld [vmem:[%s449_s8 + $0x18] sm:$0xff] (!%p854_p4)  ;;  %v454_v38 = vld [vmem:[%s449_s8 + $0x20] sm:$0xff] (!%p854_p4)  ;;  %v455_v39 = vld [vmem:[%s449_s8 + $0x28] sm:$0xff] (!%p854_p4) }
 0x174   : > { %930 = vmatpush3.bf16.msra.mxu0 (!%p854_p4), %v450_v34  ;;  %v456_v40 = vld [vmem:[%s449_s8 + $0x30] sm:$0xff] (!%p854_p4)  ;;  %v457_v41 = vld [vmem:[%s449_s8 + $0x38] sm:$0xff] (!%p854_p4)  ;;  %v524_v50 = vld [vmem:[%s523_s30] sm:$0xff] (!%p854_p4) }
 0x175   : > { %931 = vmatprep.subr.bf16.mxu0 %v451_v35  ;;  %v526_v46 = vld [vmem:[%s523_s30 + $0x10] sm:$0xff]  ;;  %v527_v49 = vld [vmem:[%s523_s30 + $0x18] sm:$0xff]  ;;  %v525_v53 = vld [vmem:[%s523_s30 + $0x8] sm:$0xff] }
 0x178   : > { %932 = vmatpush3.bf16.msra.mxu0 %v451_v35 }
 0x179   : > { %933 = vmatprep.subr.bf16.mxu0 %v452_v36 }
 0x17c   : > { %934 = vmatpush3.bf16.msra.mxu0 %v452_v36 }
 0x17d   : > { %935 = vmatprep.subr.bf16.mxu0 %v453_v37 }
 0x180   : > { %936 = vmatpush3.bf16.msra.mxu0 %v453_v37 }
 0x181   : > { %937 = vmatprep.subr.bf16.mxu0 %v454_v38 }
 0x184   : > { %938 = vmatpush3.bf16.msra.mxu0 %v454_v38 }
 0x185   : > { %939 = vmatprep.subr.bf16.mxu0 %v455_v39 }
 0x188   : > { %940 = vmatpush3.bf16.msra.mxu0 %v455_v39 }
 0x189   : > { %941 = vmatprep.subr.bf16.mxu0 %v456_v40 }
 0x18c   : > { %942 = vmatpush3.bf16.msra.mxu0 %v456_v40 }
 0x18d   : > { %943 = vmatprep.subr.bf16.mxu0 %v457_v41 }
 0x190   : > { %944 = vmatpush3.bf16.msra.mxu0 %v457_v41 }
 0x193   : > { %946 = vmatmul.mubr.bf16.vlgmr.msra.gmra.mrb[0].mxu0 %v858_v42 }
 0x266   : > { %v947_v43 = vpop.f32.mrb[0].mxu0 }
 0x267   : > { %v521_v44 = vmul.f32 0.9, %v947_v43  ;;  %v504_v45 = vpop.f32.mrb[1].mxu0 }
 0x268   : > { %v519_v47 = vmul.f32 0.9, %v504_v45  ;;  %v948_v48 = vpop.f32.mrb[2].mxu0 }
 0x269   : > { %v522_v51 = vmul.f32 0.9, %v948_v48  ;;  %v507_v52 = vpop.f32.mrb[3].mxu0  ;;  %v530_v55 = vadd.f32 %v526_v46, %v521_v44 }
 0x26a   : > { %v520_v54 = vmul.f32 0.9, %v507_v52  ;;  %v528_v57 = vadd.f32 %v524_v50, %v519_v47 }
 0x26b   : > { %v531_v56 = vadd.f32 %v527_v49, %v522_v51 }
 0x26c   : > { %v529_v58 = vadd.f32 %v525_v53, %v520_v54 }
 0x26d   : > { %v533_v59 = vpack.c.bf16 %v531_v56, %v530_v55 }
 0x26e   : > { %v532_v60 = vpack.c.bf16 %v529_v58, %v528_v57 }
 0x26f   : > { %541 = vst [vmem:[%s539_s27 + $0x8] sm:$0xff] %v533_v59 }
 0x270   : > { %540 = vst [vmem:[%s539_s27] sm:$0xff] %v532_v60 }
 0x271 PF: > { %p861_p5 = scmp.ne.s32.totalorder %s1278_s22, 4 }
 0x272   : > { %v1080_v61 = vld [vmem:[#allocation9] sm:$0xff] (!%p861_p5)   ;;  %s546_s21 = sshra.s32 (!%p861_p5), %s1530_s29, 4  ;;  %v1081_v62 = vld [vmem:[#allocation9 + $0x8] sm:$0xff] (!%p861_p5)   ;;  %s862_s28 = sshll.u32 (!%p861_p5), %s1663_s13, 3  ;;  %v1082_v63 = vld [vmem:[#allocation9 + $0x10] sm:$0xff] (!%p861_p5)  }
 0x273   : > { %545 = sbr.rel (%p861_p5) target bundleno = 1197 (0x4ad), region = 64  ;;  %949 = vmatprep.subr.bf16.mxu0 (!%p861_p5), %v1080_v61  ;;  %s549_s12 = sadd.s32 (!%p861_p5), %s862_s28, %s546_s21  ;;  %v1083_v0 = vld [vmem:[#allocation9 + $0x18] sm:$0xff] (!%p861_p5)   ;;  %v1084_v2 = vld [vmem:[#allocation9 + $0x20] sm:$0xff] (!%p861_p5)   ;;  %v1085_v3 = vld [vmem:[#allocation9 + $0x28] sm:$0xff] (!%p861_p5)  }
 0x274   : > { %950 = vmatpush3.bf16.msra.mxu0 (!%p861_p5), %v1080_v61  ;;  %s863_s16 = sshll.u32 (!%p861_p5), %s549_s12, 3  ;;  %v1086_v4 = vld [vmem:[#allocation9 + $0x30] sm:$0xff] (!%p861_p5)   ;;  %v1087_v5 = vld [vmem:[#allocation9 + $0x38] sm:$0xff] (!%p861_p5)   ;;  %v864_v7 = vld [vmem:[%s1629_s4] ss:$0 sm:$0xff] (!%p861_p5)  ;;  %s714_s6 = scalar_lea.vmem (!%p861_p5), [#allocation10], %s1530_s29 }
 0x275   : > { %951 = vmatprep.subr.bf16.mxu0 (!%p861_p5), %v1081_v62  ;;  %s551_s17 = scalar_lea.vmem (!%p861_p5), [#allocation3], %s863_s16 }
 0x277   : > { %v552_v1 = vld [vmem:[%s551_s17] sm:$0xff] (!%p861_p5)  ;;  %v553_v6 = vld [vmem:[%s551_s17 + $0x8] sm:$0xff] (!%p861_p5) }
 0x278   : > { %952 = vmatpush3.bf16.msra.mxu0 (!%p861_p5), %v1081_v62  ;;  %965 = vmatprep.mubr.bf16.mxu0 (!%p861_p5), %v552_v1 }
 0x279   : > { %953 = vmatprep.subr.bf16.mxu0 (!%p861_p5), %v1082_v63 }
 0x27c   : > { %954 = vmatpush3.bf16.msra.mxu0 %v1082_v63 }
 0x27d   : > { %955 = vmatprep.subr.bf16.mxu0 %v1083_v0 }
 0x280   : > { %956 = vmatpush3.bf16.msra.mxu0 %v1083_v0 }
 0x281   : > { %957 = vmatprep.subr.bf16.mxu0 %v1084_v2 }
 0x284   : > { %958 = vmatpush3.bf16.msra.mxu0 %v1084_v2 }
 0x285   : > { %959 = vmatprep.subr.bf16.mxu0 %v1085_v3 }
 0x288   : > { %960 = vmatpush3.bf16.msra.mxu0 %v1085_v3 }
 0x289   : > { %961 = vmatprep.subr.bf16.mxu0 %v1086_v4 }
 0x28c   : > { %962 = vmatpush3.bf16.msra.mxu0 %v1086_v4 }
 0x28d   : > { %963 = vmatprep.subr.bf16.mxu0 %v1087_v5 }
 0x290   : > { %964 = vmatpush3.bf16.msra.mxu0 %v1087_v5 }
 0x293   : > { %966 = vmatmul.mubr.bf16.vlgmr.msra.gmra.mrb[0].mxu0 %v553_v6 }
 0x366   : > { %v967_v8 = vpop.f32.mrb[0].mxu0 }
 0x367   : > { %v668_v9 = vadd.f32 %v967_v8, %v864_v7  ;;  %v659_v10 = vpop.f32.mrb[1].mxu0 }
 0x368   : > { %v660_v11 = vadd.f32 %v864_v7, %v659_v10  ;;  %v968_v12 = vpop.f32.mrb[2].mxu0 }
 0x369   : > { %678 = vmax.xlane.f32.xlu1 %v668_v9  ;;  %v662_v13 = vpop.f32.mrb[3].mxu0  ;;  %v671_v14 = vadd.f32 %v968_v12, %v864_v7 }
 0x36a   : > { %674 = vmax.xlane.f32.xlu0 %v660_v11  ;;  %v663_v15 = vadd.f32 %v864_v7, %v662_v13 }
 0x36d   : > { %680 = vmax.xlane.f32.xlu1 %v671_v14 }
 0x36e   : > { %676 = vmax.xlane.f32.xlu0 %v663_v15 }
 0x3f6   : > { %v679_v16 = vpop.xlane.xlu1 %678 }
 0x3f7   : > { %v684_v17 = vsub.f32 %v668_v9, %v679_v16  ;;  %v675_v18 = vpop.xlane.xlu0 %674 }
 0x3f8   : > { %v682_v19 = vsub.f32 %v660_v11, %v675_v18 }
 0x3f9   : > { %v690_v22 = vmul.f32 1.442695, %v684_v17 }
 0x3fa   : > { %v686_v20 = vmul.f32 1.442695, %v682_v19  ;;  %v681_v21 = vpop.xlane.xlu1 %680 }
 0x3fb   : > { %v677_v23 = vpop.xlane.xlu0 %676  ;;  %v685_v24 = vsub.f32 %v671_v14, %v681_v21 }
 0x3fc   : > { %1088 = vpow2.f32 %v686_v20  ;;  %v683_v25 = vsub.f32 %v663_v15, %v677_v23 }
 0x3fd   : > { %1090 = vpow2.f32 %v690_v22  ;;  %v692_v27 = vmul.f32 1.442695, %v685_v24 }
 0x3fe   : > { %v688_v26 = vmul.f32 1.442695, %v683_v25 }
 0x400   : > { %1092 = vpow2.f32 %v688_v26 }
 0x401   : > { %1094 = vpow2.f32 %v692_v27 }
 0x406   : > { %v1089_v28 = vpop.eup %1088 }
 0x407   : > { %694 = vadd.xlane.f32.xlu0 %v1089_v28  ;;  %v1091_v29 = vpop.eup %1090 }
 0x40a   : > { %v1093_v30 = vpop.eup %1092 }
 0x40b   : > { %698 = vadd.xlane.f32.xlu0 %v1091_v29  ;;  %696 = vadd.xlane.f32.xlu1 %v1093_v30  ;;  %v1095_v31 = vpop.eup %1094 }
 0x40f   : > { %700 = vadd.xlane.f32.xlu1 %v1095_v31 }
 0x494   : > { %v695_v32 = vpop.xlane.xlu0 %694 }
 0x495   : > { %1096 = vlog2.f32 %v695_v32 }
 0x498   : > { %v697_v33 = vpop.xlane.xlu1 %696  ;;  %v699_v34 = vpop.xlane.xlu0 %698 }
 0x499   : > { %1098 = vlog2.f32 %v697_v33 }
 0x49a   : > { %1100 = vlog2.f32 %v699_v34 }
 0x49c   : > { %v701_v35 = vpop.xlane.xlu1 %700 }
 0x49d   : > { %1102 = vlog2.f32 %v701_v35 }
 0x49f   : > { %v1097_v36 = vpop.eup %1096 }
 0x4a0   : > { %v703_v37 = vmul.f32 0.6931472, %v1097_v36 }
 0x4a2   : > { %v710_v38 = vsub.f32 %v682_v19, %v703_v37 }
 0x4a3   : > { %v1099_v39 = vpop.eup %1098 }
 0x4a4   : > { %v1101_v40 = vpop.eup %1100  ;;  %715 = vst [vmem:[%s714_s6] sm:$0xff] %v710_v38  ;;  %v705_v41 = vmul.f32 0.6931472, %v1099_v39 }
 0x4a5   : > { %v707_v42 = vmul.f32 0.6931472, %v1101_v40 }
 0x4a6   : > { %v711_v43 = vsub.f32 %v683_v25, %v705_v41 }
 0x4a7   : > { %v1103_v44 = vpop.eup %1102  ;;  %v712_v45 = vsub.f32 %v684_v17, %v707_v42 }
 0x4a8   : > { %716 = vst [vmem:[%s714_s6 + $0x8] sm:$0xff] %v711_v43  ;;  %v709_v46 = vmul.f32 0.6931472, %v1103_v44 }
 0x4a9   : > { %717 = vst [vmem:[%s714_s6 + $0x10] sm:$0xff] %v712_v45 }
 0x4aa   : > { %v713_v47 = vsub.f32 %v685_v24, %v709_v46 }
 0x4ac   : > { %718 = vst [vmem:[%s714_s6 + $0x18] sm:$0xff] %v713_v47 }
 0x4ad PF: > { %s1647_s14 = sadd.s32 4294967295, %s1290_s25   ;;  %s1297_s29 = smov [#allocation10]  }
 0x4ae   : > { %p1575_p8 = scmp.eq.s32.totalorder %s1647_s14, 19  ;;  %s725_s9 = sshll.u32 %s1297_s29, 4  ;;  %s726_s9 = int_to_ptr.vmem [resolvable:$true] %s725_s9 }
 0x4af   : > { %s1190_s26 = scalar_lea.vmem %s726_s9, 2048  ;;  %p1197_p0 = scmp.lt.s32.totalorder %s726_s9, %s726_s9 }
 0x4b0   : > { %p1191_p7 = scmp.ne.s32.totalorder %s726_s9, %s1190_s26  ;;  %p1198_p3 = scmp.lt.s32.totalorder %s1190_s26, %s1190_s26 }
 0x4b2   : > { %p1192_p10 = pnand %p1191_p7, %p1575_p8  ;;  %p1199_p6 = por %p1198_p3, %p1197_p0 }
 0x4b4   : > { %p1193_p12 = pneg %p1192_p10 }
 0x4b6   : > { %p1200_p13 = pnand %p1199_p6, %p1193_p12 }
 0x4b8   : > { %1203 = shalt.err (!%p1200_p13)
}
 0x4b9   : > { %s1204_s10 = scalar_lea.hbm %s1630_s5, 2048 }
 0x4ba   : > { %p1205_p2 = scmp.ne.s32.totalorder %s1630_s5, %s1204_s10  ;;  %p1210_p1 = scmp.lt.u32.totalorder %s1204_s10, %s1630_s5 }
 0x4bc   : > { %p1206_p9 = pnand %p1205_p2, %p1575_p8 }
 0x4be   : > { %p1207_p11 = pneg %p1206_p9 }
 0x4c0   : > { %p1212_p4 = pnand %p1210_p1, %p1207_p11 }
 0x4c2   : > { %1215 = shalt.err (!%p1212_p4)
}
 0x4c3   : > { %s1298_s16 = smov 128   ;;  %s1299_s17 = smov 8  }
 0x4c4   : > { %980 = dma.vmem_to_hbm [thread:$0]  (%p1575_p8), %s726_s9, 2048, %s1630_s5, [#allocation6], %s1298_s16, %s1298_s16, %s1299_s17  }
 0x4c5   : > { %1257 = dma.done.wait (%p1575_p8), [#allocation6], 2048  }
 0x4c6   : > { %1259 = vsyncadd (%p1575_p8), [#allocation6], 4294965248 }
 0x4c7 PF: > { %s20_s25 = sadd.s32 1, %s1290_s25   ;;  %s1649_s18 = smov %s1266_s19 }
 0x4c8   : > { %p17_p5 = scmp.ge.s32.totalorder %s20_s25, 22   ;;  %s1650_s19 = smov %s1270_s20 }
 0x4c9   : > { %s1651_s20 = smov %s1471_s15  ;;  %s1652_s21 = smov %s1282_s23 }
 0x4ca   : > { %s1653_s22 = smov %s1286_s24  ;;  %s1654_s23 = smov %s1657_s7 }
 0x4cb   : > { %s1655_s24 = smov %s1661_s11  ;;  %19 = sbr.rel (!%p17_p5) target bundleno = 7 (0x7), region = 104 }
 0x4d2   :  { %741 = vsyncpa [#allocation5], 1 }
 0x4d3   :  { %743 = vsyncpa [#allocation5 + $0x1], 1 }
 0x4d4   :  { %744 = vsyncpa [#allocation8], 1 }
 0x4d5   :  { %745 = vsyncpa [#allocation6], 1 }
 0x4d6   :  { %747 = vsyncpa [#allocation6 + $0x1], 1 }

</bundles_post_ra>
